<compile_context>
chip_gen: v6e
topology: v6e:2x2x1
jax: 0.10.0
libtpu: 0.0.40
codegen_flags: <defaults>
</compile_context>

<pallas_src>
import functools
import math

import jax
import jax.numpy as jnp
import numpy as np
from jax.experimental import pallas as pl
from jax.experimental.pallas import tpu as pltpu


def _layernorm(x, gamma, beta, eps):
    mean = jnp.mean(x, axis=-1, keepdims=True)
    var = jnp.mean((x - mean) ** 2, axis=-1, keepdims=True)  # biased var (PyTorch LN)
    return (x - mean) * jax.lax.rsqrt(var + eps) * gamma + beta


def bert_layer_kernel(
    xq_ref,      # (TQ, H)   query-tile slab of hidden_states (residual), f32
    xkv_ref,     # (S, H)    full-sequence slab (K/V projections), matmul dtype
    mask_ref,    # (1, S)    additive attention mask, f32
    wq_ref, wk_ref, wv_ref, wad_ref,   # (H, H) each, matmul dtype
    wi_ref,      # (H, I)    matmul dtype
    wo_ref,      # (I, H)    matmul dtype
    bh_ref,      # (5, H)    f32: rows = bq, bk, bv, b_attn_dense, b_out_dense
    bi_ref,      # (1, I)    f32: intermediate bias
    ln_ref,      # (4, H)    f32: rows = gamma1, beta1, gamma2, beta2
    out_ref,     # (TQ, H)
    *scratch,    # () or (k_scratch (S, H), v_scratch (S, H)) in matmul dtype
    num_heads, head_size, eps, approx_recip, cache_kv, gelu_tanh,
):
    f32 = jnp.float32
    cdt = wq_ref.dtype            # matmul (MXU) input dtype

    # ---- hoisted loads (read each small param exactly once per step) ----
    x_q = xq_ref[...].astype(f32)     # residual kept in f32
    mask = mask_ref[...].astype(f32)  # (1, S)

    bh = bh_ref[...].astype(f32)
    bq, bk, bv, bad, bo = bh[0:1, :], bh[1:2, :], bh[2:3, :], bh[3:4, :], bh[4:5, :]
    bi = bi_ref[...].astype(f32)
    lnp = ln_ref[...].astype(f32)
    g1, be1, g2, be2 = lnp[0:1, :], lnp[1:2, :], lnp[2:3, :], lnp[3:4, :]

    xq_c = x_q.astype(cdt)

    # ---- Q projection (MXU, f32 accumulation); fold 1/sqrt(hd) into q ----
    scale = 1.0 / math.sqrt(head_size)
    q = (jnp.dot(xq_c, wq_ref[...], preferred_element_type=f32) + bq) * scale

    def project_kv():
        x_kv = xkv_ref[...].astype(cdt)   # no-op: pre-cast in the wrapper
        k_new = (jnp.dot(x_kv, wk_ref[...], preferred_element_type=f32) + bk).astype(cdt)
        v_new = (jnp.dot(x_kv, wv_ref[...], preferred_element_type=f32) + bv).astype(cdt)
        return k_new, v_new

    if cache_kv:
        k_scr, v_scr = scratch

        @pl.when(pl.program_id(1) == 0)
        def _():
            k_new, v_new = project_kv()
            k_scr[...] = k_new
            v_scr[...] = v_new

        k = k_scr[...]
        v = v_scr[...]
    else:
        k, v = project_kv()

    tq = q.shape[0]
    s_len = k.shape[0]
    q4 = q.reshape(tq, num_heads, head_size)
    k4 = k.reshape(s_len, num_heads, head_size)
    v4 = v.reshape(s_len, num_heads, head_size)
    # TODO(synk): audit the Mosaic dump for relayouts around these head_size-wide
    # reshapes (64-lane minor dim at BERT-base); restructure via pltpu.einshape
    # if XLU copies show up around the two attention einsums.

    # ---- batched multi-head attention (single dot_general per stage) ----
    scores = jnp.einsum(
        "qnd,knd->nqk", q4.astype(cdt), k4, preferred_element_type=f32,
    )                                   # (NH, TQ, S)
    scores = scores + mask              # (1, S) broadcasts over heads / rows

    m = jnp.max(scores, axis=-1, keepdims=True)
    e = jnp.exp(scores - m)
    denom = jnp.sum(e, axis=-1, keepdims=True)
    if approx_recip:
        probs = e * pl.reciprocal(denom, approx=True)   # EUP slot, ~free
    else:
        probs = e / denom

    ctx = jnp.einsum(
        "nqk,knd->qnd", probs.astype(cdt), v4, preferred_element_type=f32,
    )                                   # (TQ, NH, hd)
    attn = ctx.reshape(tq, num_heads * head_size)       # (TQ, H)

    # ---- add & norm 1 (attention output projection; dropout = identity) ----
    proj = jnp.dot(attn.astype(cdt), wad_ref[...], preferred_element_type=f32) + bad
    ln1 = _layernorm(proj + x_q, g1, be1, eps)

    # ---- FFN: exact (erf) GELU by default, matching F.gelu ----
    inter = jnp.dot(ln1.astype(cdt), wi_ref[...], preferred_element_type=f32) + bi
    if gelu_tanh:
        c = math.sqrt(2.0 / math.pi)
        inter = 0.5 * inter * (1.0 + jnp.tanh(c * (inter + 0.044715 * inter * inter * inter)))
    else:
        inter = 0.5 * inter * (1.0 + jax.lax.erf(inter * (1.0 / math.sqrt(2.0))))

    # ---- add & norm 2 (dropout = identity) ----
    outp = jnp.dot(inter.astype(cdt), wo_ref[...], preferred_element_type=f32) + bo
    ln2 = _layernorm(outp + ln1, g2, be2, eps)

    out_ref[...] = ln2.astype(out_ref.dtype)


def bert_layer(
    x, mask_b1s, params, *, num_heads, eps=1e-12,
    matmul_dtype=None, q_block=None, approx_recip=None, gelu_tanh=False,
):
    """x: (B, S, H) f32; mask_b1s: (B, 1, S) additive attention mask."""
    B, S, H = x.shape
    I = params["wi"].shape[1]
    head_size = H // num_heads

    if matmul_dtype is None:
        matmul_dtype = x.dtype
    wdt = jnp.dtype(matmul_dtype)
    if approx_recip is None:
        approx_recip = wdt == jnp.dtype(jnp.bfloat16)

    # Physical per-TensorCore VMEM: drives default tile size and the scoped limit.
    phys_vmem = 128 << 20
    try:
        phys_vmem = int(pltpu.get_tpu_info().vmem_capacity_bytes)
    except Exception:
        pass

    if q_block is None:
        # v7x (64 MiB VMEM): 128-row query tiles; v5e/v6e (128 MiB): 256.
        # (On v6e a full-S tile is also viable once weights are single-buffered.)
        q_block = 128 if phys_vmem <= (64 << 20) else 256

    # ---- query-tile selection + optional padding to an MXU-friendly tile ----
    if S <= q_block:
        q_tile, S_pad = S, S
    else:
        q_tile = q_block
        assert q_tile % 8 == 0, "q_block must be a multiple of 8"
        S_pad = ((S + q_tile - 1) // q_tile) * q_tile

    x_p, mask_p = x, mask_b1s
    if S_pad != S:
        pad = S_pad - S
        x_p = jnp.pad(x, ((0, 0), (0, pad), (0, 0)))
        # padded key columns must be masked out of every softmax row
        mask_p = jnp.pad(mask_b1s, ((0, 0), (0, 0), (0, pad)), constant_values=-1e9)

    n_qt = S_pad // q_tile
    # Cache K/V in VMEM scratch across the query tiles of one batch element
    # (qt axis "arbitrary").  With B == 1 keep qt "parallel" so both
    # TensorCores get work on v7x, at the cost of per-tile K/V recompute.
    cache_kv = (n_qt > 1) and (B > 1)

    kernel = functools.partial(
        bert_layer_kernel,
        num_heads=num_heads, head_size=head_size, eps=eps,
        approx_recip=bool(approx_recip), cache_kv=cache_kv,
        gelu_tanh=bool(gelu_tanh),
    )

    # cast matmul weights to the MXU dtype (halves weight VMEM / DMA on bf16)
    wq = params["wq"].astype(wdt)
    wk = params["wk"].astype(wdt)
    wv = params["wv"].astype(wdt)
    wad = params["wad"].astype(wdt)
    wi = params["wi"].astype(wdt)
    wo = params["wo"].astype(wdt)

    f32 = jnp.float32
    # pack the five (1, H) biases and four (1, H) LN params into two slabs
    bias_h = jnp.concatenate(
        [params["bq"], params["bk"], params["bv"], params["bad"], params["bo"]],
        axis=0,
    ).astype(f32)                                  # (5, H)
    bi = params["bi"].astype(f32)                  # (1, I)
    ln_pack = jnp.concatenate(
        [params["g1"], params["be1"], params["g2"], params["be2"]], axis=0
    ).astype(f32)                                  # (4, H)

    # K/V slab pre-cast to the matmul dtype in the wrapper: one-time XLA cast,
    # halves the per-batch-element streaming DMA and drops the in-kernel cast.
    xkv = x_p.astype(wdt) if x_p.dtype != wdt else x_p

    def const_spec(shape):
        # constant-index parameter block: single pipeline buffer, DMA'd once.
        return pl.BlockSpec(shape, lambda b, qt: (0,) * len(shape),
                            pipeline_mode=pl.Buffered(1))

    in_specs = [
        pl.BlockSpec((None, q_tile, H), lambda b, qt: (b, qt, 0)),  # x query tile
        pl.BlockSpec((None, S_pad, H), lambda b, qt: (b, 0, 0)),    # x full-S (K/V)
        pl.BlockSpec((None, 1, S_pad), lambda b, qt: (b, 0, 0)),    # mask
        const_spec((H, H)), const_spec((H, H)), const_spec((H, H)), const_spec((H, H)),
        const_spec((H, I)), const_spec((I, H)),
        const_spec((5, H)), const_spec((1, I)), const_spec((4, H)),
    ]

    scratch_shapes = []
    if cache_kv:
        scratch_shapes = [pltpu.VMEM((S_pad, H), wdt), pltpu.VMEM((S_pad, H), wdt)]

    # ---- scoped-VMEM budget from an explicit per-buffer estimate ----
    w_is = wdt.itemsize
    x_is = jnp.dtype(x.dtype).itemsize
    est = (
        (4 * H * H + 2 * H * I) * w_is          # weights (single-buffered)
        + (5 * H + I + 4 * H) * 4               # packed biases / LN (single-buffered)
        + 2 * q_tile * H * x_is                 # xq (double-buffered)
        + 2 * S_pad * H * w_is                  # xkv (double-buffered)
        + 2 * S_pad * 4                         # mask
        + 2 * q_tile * H * x_is                 # output (double-buffered)
        + (2 * S_pad * H * w_is if cache_kv else 0)    # K/V scratch
        + 3 * num_heads * q_tile * S_pad * 4    # scores / exp / probs (f32)
        + 2 * q_tile * I * 4                    # FFN intermediate temporaries
        + 8 * q_tile * H * 4                    # q/ctx/ln/residual temporaries
        + 2 * S_pad * H * 4                     # K/V f32 accumulators at qt==0
    )
    vmem_limit = max(int(est * 1.4), 32 << 20)
    vmem_limit = min(vmem_limit, int(phys_vmem * 0.9), 110 << 20)

    out = pl.pallas_call(
        kernel,
        out_shape=jax.ShapeDtypeStruct((B, S_pad, H), x.dtype),
        grid=(B, n_qt),
        in_specs=in_specs,
        out_specs=pl.BlockSpec((None, q_tile, H), lambda b, qt: (b, qt, 0)),
        scratch_shapes=scratch_shapes,
        compiler_params=pltpu.CompilerParams(
            dimension_semantics=("parallel", "arbitrary" if cache_kv else "parallel"),
            vmem_limit_bytes=vmem_limit,
        ),
    )(x_p, xkv, mask_p, wq, wk, wv, wad, wi, wo, bias_h, bi, ln_pack)

    if S_pad != S:
        out = out[:, :S, :]
    return out


def ref_bert_layer(x, mask_b11s, p, *, num_heads, eps=1e-12):
    """Pure-JAX reference mirroring the PyTorch BertLayer forward (eval mode)."""
    B, S, H = x.shape
    hd = H // num_heads

    def lin(t, w, b):
        return t @ w + b.reshape(-1)

    def split_heads(t):
        return t.reshape(B, S, num_heads, hd).transpose(0, 2, 1, 3)

    q = split_heads(lin(x, p["wq"], p["bq"]))
    k = split_heads(lin(x, p["wk"], p["bk"]))
    v = split_heads(lin(x, p["wv"], p["bv"]))

    scores = jnp.einsum("bhqd,bhkd->bhqk", q, k) / math.sqrt(hd) + mask_b11s
    probs = jax.nn.softmax(scores, axis=-1)
    ctx = jnp.einsum("bhqk,bhkd->bhqd", probs, v).transpose(0, 2, 1, 3).reshape(B, S, H)

    def ln(t, g, b):
        mu = jnp.mean(t, axis=-1, keepdims=True)
        var = jnp.mean((t - mu) ** 2, axis=-1, keepdims=True)
        return (t - mu) * jax.lax.rsqrt(var + eps) * g.reshape(-1) + b.reshape(-1)

    ln1 = ln(lin(ctx, p["wad"], p["bad"]) + x, p["g1"], p["be1"])
    inter = lin(ln1, p["wi"], p["bi"])
    inter = 0.5 * inter * (1.0 + jax.lax.erf(inter / math.sqrt(2.0)))
    ln2 = ln(lin(inter, p["wo"], p["bo"]) + ln1, p["g2"], p["be2"])
    return ln2


def _make_params(key, H, I):
    keys = jax.random.split(key, 12)

    def w(k, shape, scale=0.02):
        return (scale * jax.random.normal(k, shape)).astype(jnp.float32)

    return {
        "wq": w(keys[0], (H, H)), "bq": w(keys[1], (1, H)),
        "wk": w(keys[2], (H, H)), "bk": w(keys[3], (1, H)),
        "wv": w(keys[4], (H, H)), "bv": w(keys[5], (1, H)),
        "wad": w(keys[6], (H, H)), "bad": w(keys[7], (1, H)),
        "g1": jnp.ones((1, H), jnp.float32), "be1": jnp.zeros((1, H), jnp.float32),
        "wi": w(keys[8], (H, I)), "bi": w(keys[9], (1, I)),
        "wo": w(keys[10], (I, H)), "bo": w(keys[11], (1, H)),
        "g2": jnp.ones((1, H), jnp.float32), "be2": jnp.zeros((1, H), jnp.float32),
    }


def _make_inputs(key, B, S, H):
    xkey, mkey = jax.random.split(key)
    x = jax.random.normal(xkey, (B, S, H), dtype=jnp.float32)
    valid = (jax.random.uniform(mkey, (B, S)) < 0.8).astype(jnp.float32)
    mask_b11s = ((1.0 - valid) * -10000.0).reshape(B, 1, 1, S)
    return x, mask_b11s, mask_b11s.reshape(B, 1, S)


if __name__ == "__main__":
    eps = 1e-12
    root = jax.random.PRNGKey(0)
    kp1, kx1, kp2, kx2 = jax.random.split(root, 4)

    # ---- config 1: B=2, S=8, H=32, NH=2, I=64 (single query tile path) ----
    B, S, H, NH, I = 2, 8, 32, 2, 64
    params = _make_params(kp1, H, I)
    x, mask_b11s, mask_b1s = _make_inputs(kx1, B, S, H)
    ref = ref_bert_layer(x, mask_b11s, params, num_heads=NH, eps=eps)

    # exact-precision path (f32 matmuls) — strict check vs. the reference
    out = bert_layer(x, mask_b1s, params, num_heads=NH, eps=eps)
    out = jax.block_until_ready(out)
    np.testing.assert_allclose(np.asarray(out), np.asarray(ref), rtol=1e-4, atol=1e-4)

    # bf16-matmul perf path (f32 accumulation + f32 LN/softmax) — loose check
    out_bf16 = bert_layer(
        x, mask_b1s, params, num_heads=NH, eps=eps, matmul_dtype=jnp.bfloat16
    )
    out_bf16 = jax.block_until_ready(out_bf16)
    np.testing.assert_allclose(np.asarray(out_bf16), np.asarray(ref), rtol=5e-2, atol=5e-2)

    # ---- config 2: B=2, S=24 with q_block=16 → padded, multi-tile, cached-KV
    #      path (exercises pl.Buffered(1), K/V scratch + pl.when, padding) ----
    B2, S2 = 2, 24
    params2 = _make_params(kp2, H, I)
    x2, mask2_b11s, mask2_b1s = _make_inputs(kx2, B2, S2, H)
    ref2 = ref_bert_layer(x2, mask2_b11s, params2, num_heads=NH, eps=eps)
    out2 = bert_layer(x2, mask2_b1s, params2, num_heads=NH, eps=eps, q_block=16)
    out2 = jax.block_until_ready(out2)
    np.testing.assert_allclose(np.asarray(out2), np.asarray(ref2), rtol=1e-4, atol=1e-4)

    print("KERNEL_OK")
</pallas_src>

<mosaic_0001>
module attributes {stable_mosaic.version = 11 : i64} {
  func.func @bert_layer_kernel(%arg0: i32, %arg1: i32, %arg2: memref<1x8x32xf32, #tpu.memory_space<vmem>>, %arg3: memref<1x8x32xf32, #tpu.memory_space<vmem>>, %arg4: memref<1x1x8xf32, #tpu.memory_space<vmem>>, %arg5: memref<32x32xf32, #tpu.memory_space<vmem>>, %arg6: memref<32x32xf32, #tpu.memory_space<vmem>>, %arg7: memref<32x32xf32, #tpu.memory_space<vmem>>, %arg8: memref<32x32xf32, #tpu.memory_space<vmem>>, %arg9: memref<32x64xf32, #tpu.memory_space<vmem>>, %arg10: memref<64x32xf32, #tpu.memory_space<vmem>>, %arg11: memref<5x32xf32, #tpu.memory_space<vmem>>, %arg12: memref<1x64xf32, #tpu.memory_space<vmem>>, %arg13: memref<4x32xf32, #tpu.memory_space<vmem>>, %arg14: memref<1x8x32xf32, #tpu.memory_space<vmem>>) attributes {dimension_semantics = [#tpu.dimension_semantics<parallel>, #tpu.dimension_semantics<parallel>], iteration_bounds = array<i64: 2, 1>, scalar_prefetch = 0 : i64, scratch_operands = 0 : i64, tpu.core_type = #tpu.core_type<tc>, window_params = [{transform_indices = @transform_0, window_bounds = array<i64: 1, 8, 32>}, {transform_indices = @transform_1, window_bounds = array<i64: 1, 8, 32>}, {transform_indices = @transform_2, window_bounds = array<i64: 1, 1, 8>}, {pipeline_mode = #tpu.pipeline_mode<synchronous>, transform_indices = @transform_3, window_bounds = array<i64: 32, 32>}, {pipeline_mode = #tpu.pipeline_mode<synchronous>, transform_indices = @transform_4, window_bounds = array<i64: 32, 32>}, {pipeline_mode = #tpu.pipeline_mode<synchronous>, transform_indices = @transform_5, window_bounds = array<i64: 32, 32>}, {pipeline_mode = #tpu.pipeline_mode<synchronous>, transform_indices = @transform_6, window_bounds = array<i64: 32, 32>}, {pipeline_mode = #tpu.pipeline_mode<synchronous>, transform_indices = @transform_7, window_bounds = array<i64: 32, 64>}, {pipeline_mode = #tpu.pipeline_mode<synchronous>, transform_indices = @transform_8, window_bounds = array<i64: 64, 32>}, {pipeline_mode = #tpu.pipeline_mode<synchronous>, transform_indices = @transform_9, window_bounds = array<i64: 5, 32>}, {pipeline_mode = #tpu.pipeline_mode<synchronous>, transform_indices = @transform_10, window_bounds = array<i64: 1, 64>}, {pipeline_mode = #tpu.pipeline_mode<synchronous>, transform_indices = @transform_11, window_bounds = array<i64: 4, 32>}, {transform_indices = @transform_12, window_bounds = array<i64: 1, 8, 32>}]} {
    %c0 = arith.constant 0 : index
    %c0_0 = arith.constant 0 : index
    %c0_1 = arith.constant 0 : index
    %0 = vector.load %arg2[%c0, %c0_0, %c0_1] : memref<1x8x32xf32, #tpu.memory_space<vmem>>, vector<1x8x32xf32>
    %1 = vector.shape_cast %0 : vector<1x8x32xf32> to vector<8x32xf32>
    %c0_2 = arith.constant 0 : index
    %c0_3 = arith.constant 0 : index
    %c0_4 = arith.constant 0 : index
    %2 = vector.load %arg4[%c0_2, %c0_3, %c0_4] : memref<1x1x8xf32, #tpu.memory_space<vmem>>, vector<1x1x8xf32>
    %3 = vector.shape_cast %2 : vector<1x1x8xf32> to vector<1x8xf32>
    %c0_5 = arith.constant 0 : index
    %c0_6 = arith.constant 0 : index
    %4 = vector.load %arg11[%c0_5, %c0_6] : memref<5x32xf32, #tpu.memory_space<vmem>>, vector<5x32xf32>
    %5 = vector.extract_strided_slice %4 {offsets = [0, 0], sizes = [1, 32], strides = [1, 1]} : vector<5x32xf32> to vector<1x32xf32>
    %6 = vector.extract_strided_slice %4 {offsets = [1, 0], sizes = [1, 32], strides = [1, 1]} : vector<5x32xf32> to vector<1x32xf32>
    %7 = vector.extract_strided_slice %4 {offsets = [2, 0], sizes = [1, 32], strides = [1, 1]} : vector<5x32xf32> to vector<1x32xf32>
    %8 = vector.extract_strided_slice %4 {offsets = [3, 0], sizes = [1, 32], strides = [1, 1]} : vector<5x32xf32> to vector<1x32xf32>
    %9 = vector.extract_strided_slice %4 {offsets = [4, 0], sizes = [1, 32], strides = [1, 1]} : vector<5x32xf32> to vector<1x32xf32>
    %c0_7 = arith.constant 0 : index
    %c0_8 = arith.constant 0 : index
    %10 = vector.load %arg12[%c0_7, %c0_8] : memref<1x64xf32, #tpu.memory_space<vmem>>, vector<1x64xf32>
    %c0_9 = arith.constant 0 : index
    %c0_10 = arith.constant 0 : index
    %11 = vector.load %arg13[%c0_9, %c0_10] : memref<4x32xf32, #tpu.memory_space<vmem>>, vector<4x32xf32>
    %12 = vector.extract_strided_slice %11 {offsets = [0, 0], sizes = [1, 32], strides = [1, 1]} : vector<4x32xf32> to vector<1x32xf32>
    %13 = vector.extract_strided_slice %11 {offsets = [1, 0], sizes = [1, 32], strides = [1, 1]} : vector<4x32xf32> to vector<1x32xf32>
    %14 = vector.extract_strided_slice %11 {offsets = [2, 0], sizes = [1, 32], strides = [1, 1]} : vector<4x32xf32> to vector<1x32xf32>
    %15 = vector.extract_strided_slice %11 {offsets = [3, 0], sizes = [1, 32], strides = [1, 1]} : vector<4x32xf32> to vector<1x32xf32>
    %c0_11 = arith.constant 0 : index
    %c0_12 = arith.constant 0 : index
    %16 = vector.load %arg5[%c0_11, %c0_12] : memref<32x32xf32, #tpu.memory_space<vmem>>, vector<32x32xf32>
    %cst = arith.constant dense<0.000000e+00> : vector<8x32xf32>
    %17 = tpu.matmul %1, %16, %cst {dimension_numbers = #tpu.dot_dimension_numbers<[1], [0], [0], [1], [0, 0, 1, 1], [], []>} : vector<8x32xf32>, vector<32x32xf32>, vector<8x32xf32> -> vector<8x32xf32>
    %18 = vector.broadcast %5 : vector<1x32xf32> to vector<8x32xf32>
    %19 = arith.addf %17, %18 : vector<8x32xf32>
    %cst_13 = arith.constant 2.500000e-01 : f32
    %20 = vector.broadcast %cst_13 : f32 to vector<8x32xf32>
    %21 = arith.mulf %19, %20 : vector<8x32xf32>
    %c0_14 = arith.constant 0 : index
    %c0_15 = arith.constant 0 : index
    %c0_16 = arith.constant 0 : index
    %22 = vector.load %arg3[%c0_14, %c0_15, %c0_16] : memref<1x8x32xf32, #tpu.memory_space<vmem>>, vector<1x8x32xf32>
    %23 = vector.shape_cast %22 : vector<1x8x32xf32> to vector<8x32xf32>
    %c0_17 = arith.constant 0 : index
    %c0_18 = arith.constant 0 : index
    %24 = vector.load %arg6[%c0_17, %c0_18] : memref<32x32xf32, #tpu.memory_space<vmem>>, vector<32x32xf32>
    %cst_19 = arith.constant dense<0.000000e+00> : vector<8x32xf32>
    %25 = tpu.matmul %23, %24, %cst_19 {dimension_numbers = #tpu.dot_dimension_numbers<[1], [0], [0], [1], [0, 0, 1, 1], [], []>} : vector<8x32xf32>, vector<32x32xf32>, vector<8x32xf32> -> vector<8x32xf32>
    %26 = vector.broadcast %6 : vector<1x32xf32> to vector<8x32xf32>
    %27 = arith.addf %25, %26 : vector<8x32xf32>
    %c0_20 = arith.constant 0 : index
    %c0_21 = arith.constant 0 : index
    %28 = vector.load %arg7[%c0_20, %c0_21] : memref<32x32xf32, #tpu.memory_space<vmem>>, vector<32x32xf32>
    %cst_22 = arith.constant dense<0.000000e+00> : vector<8x32xf32>
    %29 = tpu.matmul %23, %28, %cst_22 {dimension_numbers = #tpu.dot_dimension_numbers<[1], [0], [0], [1], [0, 0, 1, 1], [], []>} : vector<8x32xf32>, vector<32x32xf32>, vector<8x32xf32> -> vector<8x32xf32>
    %30 = vector.broadcast %7 : vector<1x32xf32> to vector<8x32xf32>
    %31 = arith.addf %29, %30 : vector<8x32xf32>
    %32 = vector.shape_cast %21 : vector<8x32xf32> to vector<8x2x16xf32>
    %33 = vector.shape_cast %27 : vector<8x32xf32> to vector<8x2x16xf32>
    %34 = vector.shape_cast %31 : vector<8x32xf32> to vector<8x2x16xf32>
    "tpu.trace_start"() <{level = 10 : i32, message = "qnd,knd->nqk"}> : () -> ()
    %cst_23 = arith.constant dense<0.000000e+00> : vector<2x8x8xf32>
    %35 = tpu.matmul %32, %33, %cst_23 {dimension_numbers = #tpu.dot_dimension_numbers<[2], [2], [0], [0], [0, 1, 0, 0, 1, 0], [1], [1]>} : vector<8x2x16xf32>, vector<8x2x16xf32>, vector<2x8x8xf32> -> vector<2x8x8xf32>
    "tpu.trace_stop"() : () -> ()
    %36 = vector.shape_cast %3 : vector<1x8xf32> to vector<1x1x8xf32>
    %37 = vector.broadcast %36 : vector<1x1x8xf32> to vector<2x8x8xf32>
    %38 = arith.addf %35, %37 : vector<2x8x8xf32>
    %cst_24 = arith.constant dense<0xFF800000> : vector<2x8xf32>
    %39 = vector.multi_reduction <maximumf>, %38, %cst_24 [2] : vector<2x8x8xf32> to vector<2x8xf32>
    %40 = vector.shape_cast %39 : vector<2x8xf32> to vector<2x8x1xf32>
    %41 = vector.broadcast %40 : vector<2x8x1xf32> to vector<2x8x8xf32>
    %42 = arith.subf %38, %41 : vector<2x8x8xf32>
    %43 = math.exp %42 : vector<2x8x8xf32>
    %cst_25 = arith.constant dense<0.000000e+00> : vector<2x8xf32>
    %44 = vector.multi_reduction <add>, %43, %cst_25 [2] : vector<2x8x8xf32> to vector<2x8xf32>
    %45 = vector.shape_cast %44 : vector<2x8xf32> to vector<2x8x1xf32>
    %46 = vector.broadcast %45 : vector<2x8x1xf32> to vector<2x8x8xf32>
    %47 = arith.divf %43, %46 : vector<2x8x8xf32>
    "tpu.trace_start"() <{level = 10 : i32, message = "nqk,knd->qnd"}> : () -> ()
    %cst_26 = arith.constant dense<0.000000e+00> : vector<2x16x8xf32>
    %48 = tpu.matmul %34, %47, %cst_26 {dimension_numbers = #tpu.dot_dimension_numbers<[0], [2], [2], [1], [0, 1, 0, 2, 1, 1], [1], [0]>} : vector<8x2x16xf32>, vector<2x8x8xf32>, vector<2x16x8xf32> -> vector<2x16x8xf32>
    %49 = tpu.transpose %48, [2, 0, 1] : vector<2x16x8xf32> -> vector<8x2x16xf32>
    "tpu.trace_stop"() : () -> ()
    %50 = vector.shape_cast %49 : vector<8x2x16xf32> to vector<8x32xf32>
    %c0_27 = arith.constant 0 : index
    %c0_28 = arith.constant 0 : index
    %51 = vector.load %arg8[%c0_27, %c0_28] : memref<32x32xf32, #tpu.memory_space<vmem>>, vector<32x32xf32>
    %cst_29 = arith.constant dense<0.000000e+00> : vector<8x32xf32>
    %52 = tpu.matmul %50, %51, %cst_29 {dimension_numbers = #tpu.dot_dimension_numbers<[1], [0], [0], [1], [0, 0, 1, 1], [], []>} : vector<8x32xf32>, vector<32x32xf32>, vector<8x32xf32> -> vector<8x32xf32>
    %53 = vector.broadcast %8 : vector<1x32xf32> to vector<8x32xf32>
    %54 = arith.addf %52, %53 : vector<8x32xf32>
    %55 = arith.addf %54, %1 : vector<8x32xf32>
    %cst_30 = arith.constant dense<0.000000e+00> : vector<8xf32>
    %56 = vector.multi_reduction <add>, %55, %cst_30 [1] : vector<8x32xf32> to vector<8xf32>
    %57 = vector.shape_cast %56 : vector<8xf32> to vector<8x1xf32>
    %cst_31 = arith.constant 3.200000e+01 : f32
    %58 = vector.broadcast %cst_31 : f32 to vector<8x1xf32>
    %59 = arith.divf %57, %58 : vector<8x1xf32>
    %60 = vector.broadcast %59 : vector<8x1xf32> to vector<8x32xf32>
    %61 = arith.subf %55, %60 : vector<8x32xf32>
    %62 = arith.mulf %61, %61 : vector<8x32xf32>
    %cst_32 = arith.constant dense<0.000000e+00> : vector<8xf32>
    %63 = vector.multi_reduction <add>, %62, %cst_32 [1] : vector<8x32xf32> to vector<8xf32>
    %64 = vector.shape_cast %63 : vector<8xf32> to vector<8x1xf32>
    %cst_33 = arith.constant 3.200000e+01 : f32
    %65 = vector.broadcast %cst_33 : f32 to vector<8x1xf32>
    %66 = arith.divf %64, %65 : vector<8x1xf32>
    %67 = vector.broadcast %59 : vector<8x1xf32> to vector<8x32xf32>
    %68 = arith.subf %55, %67 : vector<8x32xf32>
    %cst_34 = arith.constant 9.99999996E-13 : f32
    %69 = vector.broadcast %cst_34 : f32 to vector<8x1xf32>
    %70 = arith.addf %66, %69 : vector<8x1xf32>
    %71 = math.rsqrt %70 : vector<8x1xf32>
    %72 = vector.broadcast %71 : vector<8x1xf32> to vector<8x32xf32>
    %73 = arith.mulf %68, %72 : vector<8x32xf32>
    %74 = vector.broadcast %12 : vector<1x32xf32> to vector<8x32xf32>
    %75 = arith.mulf %73, %74 : vector<8x32xf32>
    %76 = vector.broadcast %13 : vector<1x32xf32> to vector<8x32xf32>
    %77 = arith.addf %75, %76 : vector<8x32xf32>
    %c0_35 = arith.constant 0 : index
    %c0_36 = arith.constant 0 : index
    %78 = vector.load %arg9[%c0_35, %c0_36] : memref<32x64xf32, #tpu.memory_space<vmem>>, vector<32x64xf32>
    %cst_37 = arith.constant dense<0.000000e+00> : vector<8x64xf32>
    %79 = tpu.matmul %77, %78, %cst_37 {dimension_numbers = #tpu.dot_dimension_numbers<[1], [0], [0], [1], [0, 0, 1, 1], [], []>} : vector<8x32xf32>, vector<32x64xf32>, vector<8x64xf32> -> vector<8x64xf32>
    %80 = vector.broadcast %10 : vector<1x64xf32> to vector<8x64xf32>
    %81 = arith.addf %79, %80 : vector<8x64xf32>
    %cst_38 = arith.constant 5.000000e-01 : f32
    %82 = vector.broadcast %cst_38 : f32 to vector<8x64xf32>
    %83 = arith.mulf %82, %81 : vector<8x64xf32>
    %cst_39 = arith.constant 0.707106769 : f32
    %84 = vector.broadcast %cst_39 : f32 to vector<8x64xf32>
    %85 = arith.mulf %81, %84 : vector<8x64xf32>
    %86 = math.erf %85 : vector<8x64xf32>
    %cst_40 = arith.constant 1.000000e+00 : f32
    %87 = vector.broadcast %cst_40 : f32 to vector<8x64xf32>
    %88 = arith.addf %87, %86 : vector<8x64xf32>
    %89 = arith.mulf %83, %88 : vector<8x64xf32>
    %c0_41 = arith.constant 0 : index
    %c0_42 = arith.constant 0 : index
    %90 = vector.load %arg10[%c0_41, %c0_42] : memref<64x32xf32, #tpu.memory_space<vmem>>, vector<64x32xf32>
    %cst_43 = arith.constant dense<0.000000e+00> : vector<8x32xf32>
    %91 = tpu.matmul %89, %90, %cst_43 {dimension_numbers = #tpu.dot_dimension_numbers<[1], [0], [0], [1], [0, 0, 1, 1], [], []>} : vector<8x64xf32>, vector<64x32xf32>, vector<8x32xf32> -> vector<8x32xf32>
    %92 = vector.broadcast %9 : vector<1x32xf32> to vector<8x32xf32>
    %93 = arith.addf %91, %92 : vector<8x32xf32>
    %94 = arith.addf %93, %77 : vector<8x32xf32>
    %cst_44 = arith.constant dense<0.000000e+00> : vector<8xf32>
    %95 = vector.multi_reduction <add>, %94, %cst_44 [1] : vector<8x32xf32> to vector<8xf32>
    %96 = vector.shape_cast %95 : vector<8xf32> to vector<8x1xf32>
    %cst_45 = arith.constant 3.200000e+01 : f32
    %97 = vector.broadcast %cst_45 : f32 to vector<8x1xf32>
    %98 = arith.divf %96, %97 : vector<8x1xf32>
    %99 = vector.broadcast %98 : vector<8x1xf32> to vector<8x32xf32>
    %100 = arith.subf %94, %99 : vector<8x32xf32>
    %101 = arith.mulf %100, %100 : vector<8x32xf32>
    %cst_46 = arith.constant dense<0.000000e+00> : vector<8xf32>
    %102 = vector.multi_reduction <add>, %101, %cst_46 [1] : vector<8x32xf32> to vector<8xf32>
    %103 = vector.shape_cast %102 : vector<8xf32> to vector<8x1xf32>
    %cst_47 = arith.constant 3.200000e+01 : f32
    %104 = vector.broadcast %cst_47 : f32 to vector<8x1xf32>
    %105 = arith.divf %103, %104 : vector<8x1xf32>
    %106 = vector.broadcast %98 : vector<8x1xf32> to vector<8x32xf32>
    %107 = arith.subf %94, %106 : vector<8x32xf32>
    %cst_48 = arith.constant 9.99999996E-13 : f32
    %108 = vector.broadcast %cst_48 : f32 to vector<8x1xf32>
    %109 = arith.addf %105, %108 : vector<8x1xf32>
    %110 = math.rsqrt %109 : vector<8x1xf32>
    %111 = vector.broadcast %110 : vector<8x1xf32> to vector<8x32xf32>
    %112 = arith.mulf %107, %111 : vector<8x32xf32>
    %113 = vector.broadcast %14 : vector<1x32xf32> to vector<8x32xf32>
    %114 = arith.mulf %112, %113 : vector<8x32xf32>
    %115 = vector.broadcast %15 : vector<1x32xf32> to vector<8x32xf32>
    %116 = arith.addf %114, %115 : vector<8x32xf32>
    %c0_49 = arith.constant 0 : index
    %c0_50 = arith.constant 0 : index
    %c0_51 = arith.constant 0 : index
    %117 = vector.load %arg14[%c0_49, %c0_50, %c0_51] : memref<1x8x32xf32, #tpu.memory_space<vmem>>, vector<1x8x32xf32>
    %118 = vector.shape_cast %117 : vector<1x8x32xf32> to vector<8x32xf32>
    %119 = vector.shape_cast %116 : vector<8x32xf32> to vector<1x8x32xf32>
    tpu.vector_store %arg14[%c0_49, %c0_50, %c0_51], %119 {strides = array<i32>} : memref<1x8x32xf32, #tpu.memory_space<vmem>>, vector<1x8x32xf32>,
    return
  }
  func.func @transform_0(%arg0: i32, %arg1: i32) -> (i32, i32, i32) {
    %c0_i32 = arith.constant 0 : i32
    %c0_i32_0 = arith.constant 0 : i32
    return %arg0, %arg1, %c0_i32 : i32, i32, i32
  }
  func.func @transform_1(%arg0: i32, %arg1: i32) -> (i32, i32, i32) {
    %c0_i32 = arith.constant 0 : i32
    %c0_i32_0 = arith.constant 0 : i32
    %c0_i32_1 = arith.constant 0 : i32
    return %arg0, %c0_i32, %c0_i32_0 : i32, i32, i32
  }
  func.func @transform_2(%arg0: i32, %arg1: i32) -> (i32, i32, i32) {
    %c0_i32 = arith.constant 0 : i32
    %c0_i32_0 = arith.constant 0 : i32
    %c0_i32_1 = arith.constant 0 : i32
    return %arg0, %c0_i32, %c0_i32_0 : i32, i32, i32
  }
  func.func @transform_3(%arg0: i32, %arg1: i32) -> (i32, i32) {
    %c0_i32 = arith.constant 0 : i32
    %c0_i32_0 = arith.constant 0 : i32
    %c0_i32_1 = arith.constant 0 : i32
    return %c0_i32, %c0_i32_0 : i32, i32
  }
  func.func @transform_4(%arg0: i32, %arg1: i32) -> (i32, i32) {
    %c0_i32 = arith.constant 0 : i32
    %c0_i32_0 = arith.constant 0 : i32
    %c0_i32_1 = arith.constant 0 : i32
    return %c0_i32, %c0_i32_0 : i32, i32
  }
  func.func @transform_5(%arg0: i32, %arg1: i32) -> (i32, i32) {
    %c0_i32 = arith.constant 0 : i32
    %c0_i32_0 = arith.constant 0 : i32
    %c0_i32_1 = arith.constant 0 : i32
    return %c0_i32, %c0_i32_0 : i32, i32
  }
  func.func @transform_6(%arg0: i32, %arg1: i32) -> (i32, i32) {
    %c0_i32 = arith.constant 0 : i32
    %c0_i32_0 = arith.constant 0 : i32
    %c0_i32_1 = arith.constant 0 : i32
    return %c0_i32, %c0_i32_0 : i32, i32
  }
  func.func @transform_7(%arg0: i32, %arg1: i32) -> (i32, i32) {
    %c0_i32 = arith.constant 0 : i32
    %c0_i32_0 = arith.constant 0 : i32
    %c0_i32_1 = arith.constant 0 : i32
    return %c0_i32, %c0_i32_0 : i32, i32
  }
  func.func @transform_8(%arg0: i32, %arg1: i32) -> (i32, i32) {
    %c0_i32 = arith.constant 0 : i32
    %c0_i32_0 = arith.constant 0 : i32
    %c0_i32_1 = arith.constant 0 : i32
    return %c0_i32, %c0_i32_0 : i32, i32
  }
  func.func @transform_9(%arg0: i32, %arg1: i32) -> (i32, i32) {
    %c0_i32 = arith.constant 0 : i32
    %c0_i32_0 = arith.constant 0 : i32
    %c0_i32_1 = arith.constant 0 : i32
    return %c0_i32, %c0_i32_0 : i32, i32
  }
  func.func @transform_10(%arg0: i32, %arg1: i32) -> (i32, i32) {
    %c0_i32 = arith.constant 0 : i32
    %c0_i32_0 = arith.constant 0 : i32
    %c0_i32_1 = arith.constant 0 : i32
    return %c0_i32, %c0_i32_0 : i32, i32
  }
  func.func @transform_11(%arg0: i32, %arg1: i32) -> (i32, i32) {
    %c0_i32 = arith.constant 0 : i32
    %c0_i32_0 = arith.constant 0 : i32
    %c0_i32_1 = arith.constant 0 : i32
    return %c0_i32, %c0_i32_0 : i32, i32
  }
  func.func @transform_12(%arg0: i32, %arg1: i32) -> (i32, i32, i32) {
    %c0_i32 = arith.constant 0 : i32
    %c0_i32_0 = arith.constant 0 : i32
    return %arg0, %arg1, %c0_i32 : i32, i32, i32
  }
}

</mosaic_0001>

<bundles_post_ra>
// kernel: tpu_custom_call.1
= control target key start
LH: loop header
LB: loop body
LE: loop exit
PB: predicated region body
PF: predicated region fallthrough
CT: control target
= control target key end

     0   :  { %s2935_s0 = inlined_call_operand.hbm [shape: f32[2,8,32], index: 0, kind: input, shape index: {}]   ;;  %s2936_s1 = inlined_call_operand.hbm [shape: f32[2,8,32], index: 1, kind: input, shape index: {}]   ;;  %s2937_s2 = inlined_call_operand.hbm [shape: f32[2,1,8], index: 2, kind: input, shape index: {}]   ;;  %s2938_s3 = inlined_call_operand.vmem [shape: f32[32,32], index: 3, kind: input, shape index: {}]   ;;  %s2939_s4 = inlined_call_operand.vmem [shape: f32[32,32], index: 4, kind: input, shape index: {}]   ;;  %s2940_s5 = inlined_call_operand.vmem [shape: f32[32,32], index: 5, kind: input, shape index: {}]   ;;  %s2941_s6 = inlined_call_operand.hbm [shape: f32[32,32], index: 6, kind: input, shape index: {}]   ;;  %s2942_s7 = inlined_call_operand.hbm [shape: f32[32,64], index: 7, kind: input, shape index: {}]   ;;  %s2943_s8 = inlined_call_operand.vmem [shape: f32[64,32], index: 8, kind: input, shape index: {}]   ;;  %s2944_s9 = inlined_call_operand.vmem [shape: f32[5,32], index: 9, kind: input, shape index: {}]   ;;  %s2945_s10 = inlined_call_operand.vmem [shape: f32[1,64], index: 10, kind: input, shape index: {}]   ;;  %s2946_s11 = inlined_call_operand.vmem [shape: f32[4,32], index: 11, kind: input, shape index: {}]   ;;  %s2947_s12 = inlined_call_operand.hbm [shape: f32[2,8,32], index: 12, kind: output, shape index: {}]  }
   0x1   :  { %2966 = sst [smem:[#allocation24_spill]] %s2936_s1 }
   0x2   :  { %2967 = sst [smem:[#allocation25_spill]] %s2941_s6 }
   0x3   :  { %2968 = sst [smem:[#allocation26_spill]] %s2943_s8 }
   0x4   :  { %2969 = sst [smem:[#allocation27_spill]] %s2945_s10 }
   0x5   :  { %2970 = sst [smem:[#allocation28_spill]] %s2947_s12 }
   0x6   :  { %17 = vsyncpa [#allocation3], 0 }
   0x7   :  { %19 = vsyncpa [#allocation3 + $0x1], 0 }
   0x8   :  { %20 = vsyncpa [#allocation6], 0 }
   0x9   :  { %22 = vsyncpa [#allocation6 + $0x1], 0 }
   0xa   :  { %23 = vsyncpa [#allocation9], 0 }
   0xb   :  { %24 = vsyncpa [#allocation4], 0 }
   0xc   :  { %26 = vsyncpa [#allocation4 + $0x1], 0  ;;  %s2519_s21 = smov 0   ;;  %s2521_s22 = smov 0  }
   0xd   :  { %s2523_s23 = smov 0   ;;  %s2525_s24 = smov 0  }
   0xe   :  { %s2527_s25 = smov 0   ;;  %s2529_s26 = smov 0  }
   0xf LB: > { %2971 = sst [smem:[#allocation16_spill]] %s2418_s21  ;;  %s2550_s27 = sadd.s32 4294967295, %s2438_s26   ;;  %s2438_s26 = sphi %s2529_s26, %s32_s26   ;;  %s2434_s25 = sphi %s2527_s25, %s3014_s25   ;;  %s2430_s24 = sphi %s2525_s24, %s3013_s24   ;;  %s2426_s23 = sphi %s2523_s23, %s3009_s23   ;;  %s2422_s22 = sphi %s2521_s22, %s3012_s22   ;;  %s2418_s21 = sphi %s2519_s21, %s3011_s21  }
  0x10   : > { %2972 = sst [smem:[#allocation17_spill]] %s2426_s23  ;;  %s1917_s28 = sadd.s32 4294967294, %s2438_s26  }
  0x11   : > { %2973 = sst [smem:[#allocation18_spill]] %s2430_s24  ;;  %p66_p0 = scmp.ne.s32.totalorder %s2422_s22, %s2418_s21 }
  0x12   : > { %2974 = sst [smem:[#allocation19_spill]] %s2438_s26  ;;  %p2960_p1 = scmp.eq.s32.totalorder %s2550_s27, 0 }
  0x13   : > { %p339_p3 = scmp.eq.s32.totalorder %s1917_s28, 1  ;;  %p1918_p5 = scmp.ge.s32.totalorder %s2438_s26, 1 }
  0x14   : > { %p2559_p4 = por %p2960_p1, %p66_p0  ;;  %p346_p7 = scmp.lt.s32.totalorder %s2438_s26, 3 }
  0x15   : > { %p2564_p6 = por %p339_p3, %p66_p0  ;;  %s2440_s14 = smov [#allocation8]  }
  0x16   : > { %s2975_s29 = scalar_select %p2559_p4, 1, 0 }
  0x17   : > { %s2976_s30 = scalar_select %p2564_p6, 1, 0 }
  0x18   : > { %p2569_p8 = pnand %p1918_p5, %p346_p7  ;;  %s367_s15 = sshll.u32 %s2440_s14, 4  ;;  %s368_s15 = int_to_ptr.vmem [resolvable:$true] %s367_s15 }
  0x19   : > { %2977 = sst [smem:[#allocation20_spill]] %s2976_s30  ;;  %s44_s17 = sadd.s32 1, %s2434_s25 }
  0x1a   : > { %s2978_s13 = scalar_select %p2569_p8, 1, 0 }
  0x1b   : > { %p2115_p9 = pneg %p2569_p8  ;;  %s2225_s18 = scalar_lea.vmem %s368_s15, 512 }
  0x1c   : > { %p2226_p13 = scmp.ne.s32.totalorder %s368_s15, %s2225_s18  ;;  %p2233_p5 = scmp.lt.s32.totalorder %s368_s15, %s368_s15 }
  0x1d   : > { %p2578_p11 = pnand %p2115_p9, %p2960_p1  ;;  %p2234_p7 = scmp.lt.s32.totalorder %s2225_s18, %s2225_s18 }
  0x1f   : > { %p2961_p12 = pneg %p2578_p11  ;;  %p2235_p2 = por %p2234_p7, %p2233_p5 }
  0x21   : > { %p2228_p0 = pnand %p2226_p13, %p2961_p12 }
  0x23   : > { %p2229_p3 = pneg %p2228_p0 }
  0x25   : > { %p2236_p10 = pnand %p2235_p2, %p2229_p3 }
  0x27   : > { %2239 = shalt.err (!%p2236_p10)
}
  0x28   : > { %s2950_s19 = smov 128   ;;  %s2951_s20 = smov 8  }
  0x29   : > { %s2980_s6 = sld [smem:[#allocation25_spill]]  ;;  %p46_p2 = scmp.ge.s32.totalorder %s44_s17, 2 }
  0x2a   : > { %s53_s18 = sadd.s32 1, %s2426_s23  ;;  %p60_p9 = scmp.ne.s32.totalorder %s2426_s23, %s2422_s22 }
  0x2b   : > { %p61_p10 = scmp.eq.s32.totalorder %s2438_s26, 0  ;;  %s3016_s17 = smov (%p46_p2, %s44_s17), 0 }
  0x2c   : > { %2981 = sst [smem:[#allocation21_spill]] %s3016_s17  ;;  %p2982_p0 = scmp.eq.s32.totalorder %s2550_s27, 1 }
  0x2d   : > { %p62_p13 = por %p61_p10, %p60_p9  ;;  %s48_s21 = ssub.s32 %s2434_s25, %s3016_s17 }
  0x2e   : > { %p2604_p3 = por %p2982_p0, %p60_p9  ;;  %p2138_p5 = scmp.lt.s32.totalorder %s2438_s26, 2 }
  0x2f   : > { %2118 = dma.hbm_to_vmem [thread:$0]  (!%p2578_p11), %s2980_s6, 512, %s368_s15, [#allocation9], %s2950_s19, %s2950_s19, %s2951_s20  }
  0x30   : > { %s2983_s30 = scalar_select %p2604_p3, 1, 0 }
  0x31   : > { %p51_p7 = scmp.eq.s32.totalorder %s48_s21, 0  ;;  %s2612_s28 = sand.u32 1, %s2426_s23  }
  0x32   : > { %2984 = sst [smem:[#allocation22_spill]] %s2983_s30  ;;  %s1922_s15 = sshll.u32 %s2612_s28, 3 }
  0x33   : > { %s1923_s14 = sshll.u32 %s2434_s25, 7  ;;  %p2619_p2 = pnand %p2138_p5, %p62_p13 }
  0x34   : > { %s2617_s19 = scalar_select %p51_p7, %s2426_s23, %s53_s18  }
  0x35   : > { %s425_s6 = sand.u32 1, %s2438_s26   ;;  %s2987_s1 = sld [smem:[#allocation24_spill]] }
  0x36   : > { %2985 = sst [smem:[#allocation23_spill]] %s2617_s19  ;;  %s429_s30 = scalar_lea.vmem [#allocation5], %s1922_s15 }
  0x37   : > { %s436_s24 = sshll.u32 %s429_s30, 4  ;;  %s2443_s10 = smov [#allocation10]   ;;  %s437_s24 = int_to_ptr.vmem [resolvable:$true] %s436_s24 }
  0x38   : > { %s380_s8 = sshll.u32 %s2443_s10, 4  ;;  %s2631_s18 = scalar_lea.sflag [#allocation6], %s425_s6  ;;  %s381_s8 = int_to_ptr.vmem [resolvable:$true] %s380_s8 }
  0x39   : > { %p2962_p9 = pneg %p2619_p2  ;;  %s2253_s19 = scalar_lea.vmem %s437_s24, 128 }
  0x3a   : > { %p2254_p10 = scmp.ne.s32.totalorder %s437_s24, %s2253_s19  ;;  %s2444_s23 = smov [#allocation5]  }
  0x3b   : > { %s434_s21 = scalar_lea.hbm %s2987_s1, %s1923_s14  ;;  %s2258_s26 = sshll.u32 %s2444_s23, 4  ;;  %s2259_s26 = int_to_ptr.vmem [resolvable:$false] %s2258_s26 }
  0x3c   : > { %p2256_p13 = pnand %p2254_p10, %p2962_p9  ;;  %s2260_s12 = scalar_lea.vmem %s2259_s26, 256 }
  0x3d   : > { %p2261_p5 = scmp.lt.s32.totalorder %s437_s24, %s2259_s26  ;;  %p2262_p7 = scmp.lt.s32.totalorder %s2260_s12, %s2253_s19 }
  0x3e   : > { %p2257_p0 = pneg %p2256_p13 }
  0x3f   : > { %p2263_p1 = por %p2262_p7, %p2261_p5 }
  0x41   : > { %p2264_p12 = pnand %p2263_p1, %p2257_p0 }
  0x43   : > { %2267 = shalt.err (!%p2264_p12)
}
  0x44   : > { %2128 = dma.hbm_to_vmem [thread:$0]  (!%p2619_p2), %s434_s21, 128, %s437_s24, %s2631_s18  }
  0x45   : > { %s2279_s6 = scalar_lea.vmem %s381_s8, 512  ;;  %p2988_p10 = pneg %p2578_p11 }
  0x46   : > { %p2280_p6 = scmp.ne.s32.totalorder %s381_s8, %s2279_s6  ;;  %p2287_p3 = scmp.lt.s32.totalorder %s381_s8, %s381_s8 }
  0x47   : > { %p2288_p4 = scmp.lt.s32.totalorder %s2279_s6, %s2279_s6 }
  0x48   : > { %p2282_p13 = pnand %p2280_p6, %p2988_p10 }
  0x49   : > { %p2289_p8 = por %p2288_p4, %p2287_p3 }
  0x4a   : > { %p2283_p9 = pneg %p2282_p13 }
  0x4c   : > { %p2290_p5 = pnand %p2289_p8, %p2283_p9 }
  0x4e   : > { %2293 = shalt.err (!%p2290_p5)
}
  0x4f   : > { %s2989_s10 = smov 8   ;;  %s2990_s23 = smov 128  }
  0x50   : > { %2121 = dma.hbm_to_vmem [thread:$0]  (!%p2578_p11), %s2942_s7, 512, %s381_s8, [#allocation9], %s2990_s23, %s2990_s23, %s2989_s10  }
  0x51   : > { %s416_s19 = scalar_lea.hbm %s2935_s0, %s1923_s14  ;;  %s410_s21 = scalar_lea.vmem [#allocation2], %s1922_s15 }
  0x52   : > { %s418_s16 = sshll.u32 %s410_s21, 4  ;;  %s1926_s12 = sshll.u32 %s2434_s25, 4  ;;  %s419_s16 = int_to_ptr.vmem [resolvable:$true] %s418_s16 }
  0x53   : > { %s407_s6 = scalar_lea.sflag [#allocation3], %s2612_s28  ;;  %s2307_s1 = scalar_lea.vmem %s419_s16, 128 }
  0x54   : > { %p2308_p1 = scmp.ne.s32.totalorder %s419_s16, %s2307_s1  ;;  %p2991_p4 = pneg %p2619_p2 }
  0x55   : > { %s2445_s26 = smov [#allocation2]  }
  0x56   : > { %p2310_p6 = pnand %p2308_p1, %p2991_p4  ;;  %s2312_s30 = sshll.u32 %s2445_s26, 4  ;;  %s2313_s30 = int_to_ptr.vmem [resolvable:$false] %s2312_s30 }
  0x57   : > { %s2314_s8 = scalar_lea.vmem %s2313_s30, 256  ;;  %p2315_p11 = scmp.lt.s32.totalorder %s419_s16, %s2313_s30 }
  0x58   : > { %p2311_p8 = pneg %p2310_p6  ;;  %p2316_p12 = scmp.lt.s32.totalorder %s2314_s8, %s2307_s1 }
  0x5a   : > { %p2317_p3 = por %p2316_p12, %p2315_p11 }
  0x5c   : > { %p2318_p9 = pnand %p2317_p3, %p2311_p8 }
  0x5e   : > { %2321 = shalt.err (!%p2318_p9)
}
  0x5f   : > { %2125 = dma.hbm_to_vmem [thread:$0]  (!%p2619_p2), %s416_s19, 128, %s419_s16, %s407_s6  }
  0x60   : > { %s451_s10 = scalar_lea.hbm %s2937_s2, %s1926_s12  ;;  %s446_s23 = scalar_lea.vmem [#allocation7], %s2612_s28 }
  0x61   : > { %s453_s24 = sshll.u32 %s446_s23, 4  ;;  %p2992_p7 = pmov %p2991_p4  ;;  %s454_s24 = int_to_ptr.vmem [resolvable:$true] %s453_s24 }
  0x62   : > { %s2335_s17 = scalar_lea.vmem %s454_s24, 16  ;;  %s2446_s1 = smov [#allocation7]  }
  0x63   : > { %p2336_p0 = scmp.ne.s32.totalorder %s454_s24, %s2335_s17  ;;  %s2340_s21 = sshll.u32 %s2446_s1, 4  ;;  %s2341_s21 = int_to_ptr.vmem [resolvable:$false] %s2340_s21 }
  0x64   : > { %s2342_s26 = scalar_lea.vmem %s2341_s21, 32  ;;  %p2343_p5 = scmp.lt.s32.totalorder %s454_s24, %s2341_s21 }
  0x65   : > { %p2338_p10 = pnand %p2336_p0, %p2992_p7  ;;  %p2344_p1 = scmp.lt.s32.totalorder %s2342_s26, %s2335_s17 }
  0x67   : > { %p2339_p13 = pneg %p2338_p10  ;;  %p2345_p4 = por %p2344_p1, %p2343_p5 }
  0x69   : > { %p2346_p6 = pnand %p2345_p4, %p2339_p13 }
  0x6b   : > { %2349 = shalt.err (!%p2346_p6)
}
  0x6c   : > { %2131 = dma.hbm_to_vmem [thread:$0]  (!%p2619_p2), %s451_s10, 16, %s454_s24, %s2631_s18  }
  0x6d   : > { %p2993_p8 = scmp.ne.s32.totalorder %s2978_s13, 0 }
  0x6e   : > { %s2679_s28 = sand.u32 (!%p2993_p8), 1, %s2422_s22   ;;  %p2994_p11 = scmp.ne.s32.totalorder (!%p2993_p8), %s2975_s29, 0 }
  0x6f   : > { %462 = sbr.rel (%p2993_p8) target bundleno = 2816 (0xb00), region = 68  ;;  %s2682_s19 = sshll.u32 (!%p2993_p8), %s2679_s28, 3 }
  0x70   : > { %s465_s16 = scalar_lea.sflag (!%p2993_p8), [#allocation3], %s2679_s28  ;;  %s468_s12 = scalar_lea.vmem (!%p2993_p8), [#allocation2], %s2682_s19 }
  0x74   : > { %2401 = dma.done.wait (%p2994_p11), %s465_s16, 128  }
  0x75   : > { %2403 = vsyncadd (%p2994_p11), %s465_s16, 4294967168  ;;  %s473_s13 = sand.u32 1, %s2550_s27   ;;  %s477_s18 = scalar_lea.vmem [#allocation5], %s2682_s19 }
  0x76   : > { %s474_s20 = scalar_lea.sflag [#allocation6], %s473_s13 }
  0x77   : > { %2405 = dma.done.wait (%p2994_p11), %s474_s20, 144  }
  0x78   : > { %2407 = vsyncadd (%p2994_p11), %s474_s20, 4294967152  ;;  %s485_s6 = scalar_lea.vmem [#allocation7], %s2679_s28  ;;  %p2995_p2 = scmp.eq.s32.totalorder %s2550_s27, 0 }
  0x7a   : > { %2409 = dma.done.wait (%p2995_p2), [#allocation9], 1024   ;;  %p2996_p12 = pmov %p2995_p2 }
  0x7b   : > { %v2447_v0 = vmov 0.0   ;;  %vm2448_vm0 = vmmov 0   ;;  %v551_v1 = vld [vmem:[%s2938_s3 + $0x18] sm:$0xff]  ;;  %v550_v2 = vld [vmem:[%s2938_s3 + $0x10] sm:$0xff]  ;;  %v549_v3 = vld [vmem:[%s2938_s3 + $0x8] sm:$0xff]  ;;  %vm556_vm1 = vcmask 261120   ;;  %v552_v11 = vlaneseq }
  0x7c   : > { %2411 = vsyncadd (%p2996_p12), [#allocation9], 4294966272  ;;  %2001 = vmatprep.subr.mxu1 %v2447_v0  ;;  %2009 = vmatprep.mubr.msk.f32.mxu1 %vm2448_vm0, %v2447_v0  ;;  %v548_v4 = vld [vmem:[%s2938_s3] sm:$0xff]  ;;  %v635_v6 = vld [vmem:[%s2939_s4 + $0x18] sm:$0xff]  ;;  %s2449_s29 = smov 112   ;;  %vm872_vm2 = vcmask 130048  }
  0x7d   : > { %2023 = vmatprep.subr.mxu0 %v2447_v0  ;;  %2031 = vmatprep.mubr.msk.f32.mxu0 %vm2448_vm0, %v2447_v0  ;;  %v2721_v5 = vld [vmem:[%s468_s12] sm:$0xff]  ;;  %v634_v7 = vld [vmem:[%s2939_s4 + $0x10] sm:$0xff]  ;;  %v2750_v12 = vshrl.u32 %v552_v11, 7  ;;  %v716_v28 = vld [vmem:[%s2940_s5 + $0x18] sm:$0xff]  ;;  %vm1017_vm3 = vcmask 64512   ;;  %s2997_s16 = sld [smem:[#allocation26_spill]] }
  0x7e   : > { %2002 = vmatpush3.msra.mxu1 %v551_v1  ;;  %v633_v8 = vld [vmem:[%s2939_s4 + $0x8] sm:$0xff]  ;;  %v632_v9 = vld [vmem:[%s2939_s4] sm:$0xff]  ;;  %v631_v10 = vld [vmem:[%s477_s18] sm:$0xff]  ;;  %2024 = vmatpush3.msra.mxu0 %v716_v28  ;;  %s2998_s21 = sld [smem:[#allocation27_spill]]  ;;  %vm1663_vm4 = vcmask 523264   ;;  %s542_s20 = scalar_lea.vmem [#allocation11], %s2682_s19 }
  0x7f   : > { %2003 = vmatprep.subr.mxu1 %v2447_v0  ;;  %v554_v14 = vsub.s32 0, %v2750_v12  ;;  %v638_v15 = vsub.s32 1, %v2750_v12  ;;  %v2757_v16 = vld [vmem:[%s2944_s9] sm:$0x1f]  ;;  %v715_v29 = vld [vmem:[%s2940_s5 + $0x10] sm:$0xff]  ;;  %2025 = vmatprep.subr.mxu0 %v2447_v0  ;;  %v714_v30 = vld [vmem:[%s2940_s5 + $0x8] sm:$0xff] }
  0x80   : > { %2004 = vmatpush3.msra.mxu1 %v550_v2  ;;  %2026 = vmatpush3.msra.mxu0 %v715_v29  ;;  %v713_v31 = vld [vmem:[%s2940_s5] sm:$0xff]  ;;  %v719_v40 = vsub.s32 2, %v2750_v12  ;;  %s2999_s26 = sld [smem:[#allocation18_spill]]  ;;  %s1777_s18 = sshll.u32 %s542_s20, 4  ;;  %s1778_s18 = int_to_ptr.vmem [resolvable:$true] %s1777_s18 }
  0x81   : > { %2005 = vmatprep.subr.mxu1 %v2447_v0  ;;  %v555_v18 = vrot.slane %v2757_v16, %v554_v14  ;;  %v639_v19 = vrot.slane %v2757_v16, %v638_v15  ;;  %2027 = vmatprep.subr.mxu0 %v2447_v0  ;;  %v1936_v35 = vld [vmem:[%s485_s6] ss:$0 sm:$0xff]  ;;  %s2452_s6 = smov 16   ;;  %s3000_s12 = sld [smem:[#allocation22_spill]] }
  0x82   : > { %2006 = vmatpush3.msra.mxu1 %v549_v3  ;;  %2028 = vmatpush3.msra.mxu0 %v714_v30  ;;  %v720_v41 = vrot.slane %v2757_v16, %v719_v40  ;;  %s3001_s8 = sld [smem:[#allocation28_spill]]  ;;  %s1763_s27 = scalar_lea.sflag [#allocation4], %s2679_s28 }
  0x83   : > { %2007 = vmatprep.subr.mxu1 %v2447_v0  ;;  %2029 = vmatprep.subr.mxu0 %v2447_v0  ;;  %s2350_s14 = scalar_lea.vmem %s1778_s18, 128  ;;  %s2453_s10 = smov [#allocation11]  }
  0x84   : > { %2008 = vmatpush3.msra.mxu1 %v548_v4  ;;  %2030 = vmatpush3.msra.mxu0 %v713_v31  ;;  %p2351_p3 = scmp.ne.s32.totalorder %s1778_s18, %s2350_s14  ;;  %s2354_s23 = sshll.u32 %s2453_s10, 4  ;;  %s2355_s23 = int_to_ptr.vmem [resolvable:$false] %s2354_s23 }
  0x85   : > { %2010 = vmatmul.mubr.msk.f32.vlgmr.msra.gmra.mxu1 %vm556_vm1, %v2721_v5  ;;  %2012 = vmatprep.subr.mxu1 %v2447_v0  ;;  %s2356_s19 = scalar_lea.vmem %s2355_s23, 256  ;;  %p2357_p10 = scmp.lt.s32.totalorder %s1778_s18, %s2355_s23 }
  0x86   : > { %2013 = vmatpush3.msra.mxu1 %v635_v6  ;;  %2020 = vmatprep.mubr.msk.f32.mxu1 %vm2448_vm0, %v2447_v0  ;;  %s1952_s13 = sshll.u32 %s2999_s26, 7  ;;  %p2358_p13 = scmp.lt.s32.totalorder %s2356_s19, %s2350_s14 }
  0x87   : > { %2014 = vmatprep.subr.mxu1 %v2447_v0  ;;  %2032 = vmatmul.mubr.msk.f32.vlgmr.msra.gmra.mxu0 %vm556_vm1, %v631_v10  ;;  %p3002_p9 = scmp.ne.s32.totalorder %s3000_s12, 0 }
  0x88   : > { %2015 = vmatpush3.msra.mxu1 %v634_v7  ;;  %s1775_s15 = scalar_lea.hbm %s3001_s8, %s1952_s13  ;;  %p2359_p5 = por %p2358_p13, %p2357_p10 }
  0x89   : > { %2016 = vmatprep.subr.mxu1 %v2447_v0  ;;  %p2352_p0 = pnand %p2351_p3, %p3002_p9 }
  0x8a   : > { %2017 = vmatpush3.msra.mxu1 %v633_v8 }
  0x8b   : > { %2018 = vmatprep.subr.mxu1 %v2447_v0  ;;  %p2353_p7 = pneg %p2352_p0 }
  0x8c   : > { %2019 = vmatpush3.msra.mxu1 %v632_v9 }
  0x8d   : > { %2021 = vmatmul.mubr.msk.f32.vlgmr.msra.gmra.mxu1 %vm556_vm1, %v631_v10  ;;  %2034 = vmatprep.subr.mxu1 %v2447_v0  ;;  %p2360_p1 = pnand %p2359_p5, %p2353_p7 }
  0x8e   : > { %2038 = vmatprep.mubr.msk.f32.mxu1 %vm2448_vm0, %v2447_v0 }
 0x145   : > { %v626_v13 = vpop.f32.mrf.mxu1 }
 0x146   : > { %v627_v21 = vadd.f32 %v626_v13, %v555_v18  ;;  %v1460_v13 = vld [vmem:[#allocation8 + $0x18] sm:$0xff]  ;;  %v1458_v18 = vld [vmem:[#allocation8 + $0x8] sm:$0xff] }
 0x147   : > { %v2011_v17 = vpop.f32.mrf.mxu1  ;;  %v787_v42 = vpop.f32.mrf.mxu0 }
 0x148   : > { %v630_v24 = vmul.f32 0.25, %v627_v21  ;;  %v788_v43 = vadd.f32 %v787_v42, %v720_v41  ;;  %v1459_v17 = vld [vmem:[#allocation8 + $0x10] sm:$0xff]  ;;  %v1457_v42 = vld [vmem:[#allocation8] sm:$0xff] }
 0x149   : > { %v2033_v44 = vpop.f32.mrf.mxu0 }
 0x14d   : > { %v709_v20 = vpop.f32.mrf.mxu1 }
 0x14e   : > { %v710_v22 = vadd.f32 %v709_v20, %v639_v19  ;;  %v2450_v19 = vmov 1983009808  }
 0x14f   : > { %v2022_v23 = vpop.f32.mrf.mxu1  ;;  %v1338_v20 = vunpack.c.l.s4 %v2450_v19 }
 0x150   : > { %808 = vxpose.xlu1.b32.start.end [1/1] (short) (narrow) %v710_v22, 16  ;;  %795 = vrot.lane.b32.xlu0 %v710_v22, %s2449_s29  ;;  %v2451_v22 = vmov 1934713408  }
 0x151   : > { %v1339_v21 = vunpack.c.0.s8 %v1338_v20  ;;  %v1369_v23 = vunpack.c.l.s4 %v2451_v22 }
 0x154   : > { %792 = vrot.lane.b32.xlu0 %v630_v24, %s2449_s29 }
 0x1c2   : > { %v796_v25 = vpop.permute.xlu0 %795 }
 0x1c3   : > { %840 = vxpose.xlu1.b32.start.end [1/1] (short) (narrow) %v796_v25, 16  ;;  %v1342_v25 = vsub.s32 %v1339_v21, %v2750_v12  ;;  %v2840_v21 = vld [vmem:[%s2946_s11] sm:$0xf] }
 0x1c4   : > { %v1556_v22 = vrot.slane %v2840_v21, %v554_v14  ;;  %v1657_v14 = vld [vmem:[%s2997_s16 + $0x30] sm:$0xff] }
 0x1c6   : > { %v793_v34 = vpop.permute.xlu0 %792 }
 0x1cc   : > { %v824_v26 = vpop.trf.xlu1 }
 0x1d0   : > { %v825_v27 = vpop.trf.xlu1 }
 0x1d1   : > { %2035 = vmatpush3.msra.mxu1 %v825_v27 }
 0x1d2   : > { %2036 = vmatprep.subr.mxu1 %v2447_v0 }
 0x1d3   : > { %2037 = vmatpush3.msra.mxu1 %v824_v26  ;;  %v1370_v26 = vunpack.c.0.s8 %v1369_v23 }
 0x1d4   : > { %2039 = vmatmul.mubr.msk.f32.vlgmr.msra.gmra.mxu1 %vm872_vm2, %v630_v24  ;;  %2041 = vmatprep.subr.mxu1 %v2447_v0 }
 0x1d5   : > { %2045 = vmatprep.mubr.msk.f32.mxu1 %vm2448_vm0, %v2447_v0  ;;  %v1373_v30 = vsub.s32 %v1370_v26, %v2750_v12 }
 0x23f   : > { %v856_v32 = vpop.trf.xlu1 }
 0x243   : > { %v857_v33 = vpop.trf.xlu1 }
 0x244   : > { %2042 = vmatpush3.msra.mxu1 %v857_v33 }
 0x245   : > { %2043 = vmatprep.subr.mxu1 %v2447_v0 }
 0x246   : > { %2044 = vmatpush3.msra.mxu1 %v856_v32 }
 0x247   : > { %2046 = vmatmul.mubr.msk.f32.vlgmr.msra.gmra.mxu1 %vm872_vm2, %v793_v34 }
 0x294   : > { %v941_v36 = vpop.f32.mrf.mxu1 }
 0x295   : > { %v942_v37 = vadd.f32 %v1936_v35, %v941_v36 }
 0x296   : > { %v2040_v38 = vpop.f32.mrf.mxu1 }
 0x297   : > { %v1018_v39 = vsel %vm1017_vm3, %v942_v37, -inf }
 0x298   : > { %1019 = vmax.xlane.f32.xlu0 %v1018_v39 }
 0x2ae   : > { %799 = vrot.lane.b32.xlu0 %v788_v43, %s2449_s29 }
 0x307   : > { %v1013_v45 = vpop.f32.mrf.mxu1 }
 0x308   : > { %v1014_v46 = vadd.f32 %v1936_v35, %v1013_v45 }
 0x309   : > { %v2047_v47 = vpop.f32.mrf.mxu1 }
 0x30a   : > { %v1021_v48 = vsel %vm1017_vm3, %v1014_v46, -inf }
 0x30b   : > { %1022 = vmax.xlane.f32.xlu1 %v1021_v48 }
 0x321   : > { %v1020_v49 = vpop.xlane.xlu0 %1019 }
 0x322   : > { %v1024_v50 = vsub.f32 %v942_v37, %v1020_v49 }
 0x324   : > { %v1026_v51 = vmul.f32 1.442695, %v1024_v50 }
 0x325   : > { %v800_v54 = vpop.permute.xlu0 %799 }
 0x326   : > { %2200 = vpow2.f32 %v1026_v51  ;;  %1072 = vxpose.xlu0.b32.start.end [1/1] (short) (narrow) %v800_v54, 16 }
 0x333   : > { %v2201_v52 = vpop.eup %2200 }
 0x334   : > { %v1030_v53 = vsel %vm1017_vm3, %v2201_v52, 0.0 }
 0x335   : > { %1031 = vadd.xlane.f32.xlu1 %v1030_v53 }
 0x394   : > { %v1023_v55 = vpop.xlane.xlu1 %1022 }
 0x395   : > { %v1025_v56 = vsub.f32 %v1014_v46, %v1023_v55 }
 0x397   : > { %v1028_v57 = vmul.f32 1.442695, %v1025_v56 }
 0x399   : > { %2202 = vpow2.f32 %v1028_v57 }
 0x3a2   : > { %v1088_v63 = vpop.trf.xlu0 }
 0x3a3   : > { %2055 = vmatprep.mubr.msk.f32.mxu1 %vm1017_vm3, %v1088_v63 }
 0x3a6   : > { %v2203_v58 = vpop.eup %2202  ;;  %v1089_v4 = vpop.trf.xlu0 }
 0x3a7   : > { %v1033_v59 = vsel %vm1017_vm3, %v2203_v58, 0.0 }
 0x3a8   : > { %1034 = vadd.xlane.f32.xlu1 %v1033_v59 }
 0x3be   : > { %v1032_v60 = vpop.xlane.xlu1 %1031 }
 0x3bf   : > { %2204 = vrcp.f32 %v1032_v60 }
 0x3cc   : > { %v2205_v61 = vpop.eup %2204 }
 0x3cd   : > { %v1037_v62 = vmul.f32 %v2205_v61, %v2201_v52  ;;  %v1463_v61 = vsub.s32 3, %v2750_v12 }
 0x3cf   : > { %2048 = vmatprep.subr.msk.mxu0 %vm1017_vm3, %v1037_v62 }
 0x3d0   : > { %2049 = vmatpush3.xpose.msk.msra.mxu0 %vm1017_vm3, %v1037_v62  ;;  %v1464_v62 = vrot.slane %v2757_v16, %v1463_v61 }
 0x3d1   : > { %2058 = vmatprep.subr.mxu0 %v2447_v0 }
 0x3db   : > { %1040 = vxpose.xlu1.b32.start.end [1/1] (short) (narrow) %v788_v43, 16 }
 0x431   : > { %v1035_v1 = vpop.xlane.xlu1 %1034 }
 0x432   : > { %2206 = vrcp.f32 %v1035_v1 }
 0x43f   : > { %v2207_v2 = vpop.eup %2206 }
 0x440   : > { %v1039_v3 = vmul.f32 %v2207_v2, %v2203_v58 }
 0x442   : > { %2053 = vmatprep.subr.msk.mxu1 %vm1017_vm3, %v1039_v3 }
 0x443   : > { %2054 = vmatpush3.xpose.msk.msra.mxu1 %vm1017_vm3, %v1039_v3 }
 0x444   : > { %2069 = vmatprep.subr.mxu1 %v2447_v0 }
 0x446   : > { %2056 = vmatmul.mubr.msk.f32.vlgmr.msra.gmra.mxu1 %vm1017_vm3, %v1089_v4 }
 0x447   : > { %2077 = vmatprep.mubr.msk.f32.mxu1 %vm2448_vm0, %v2447_v0 }
 0x457   : > { %v1056_v6 = vpop.trf.xlu1 }
 0x458   : > { %2050 = vmatprep.mubr.msk.f32.mxu0 %vm1017_vm3, %v1056_v6 }
 0x45b   : > { %v1057_v7 = vpop.trf.xlu1 }
 0x45c   : > { %2051 = vmatmul.mubr.msk.f32.vlgmr.msra.gmra.mxu0 %vm1017_vm3, %v1057_v7 }
 0x45d   : > { %2066 = vmatprep.mubr.msk.f32.mxu0 %vm2448_vm0, %v2447_v0  ;;  %2059 = vmatpush3.msra.mxu0 %v1460_v13  ;;  %v1565_v13 = vld [vmem:[#allocation10 + $0x10] sm:$0xff] }
 0x45e   : > { %2060 = vmatprep.subr.mxu0 %v2447_v0 }
 0x45f   : > { %2061 = vmatpush3.msra.mxu0 %v1459_v17  ;;  %v1564_v17 = vld [vmem:[#allocation10 + $0x8] sm:$0xff] }
 0x460   : > { %2062 = vmatprep.subr.mxu0 %v2447_v0 }
 0x461   : > { %2063 = vmatpush3.msra.mxu0 %v1458_v18 }
 0x462   : > { %2064 = vmatprep.subr.mxu0 %v2447_v0 }
 0x463   : > { %2065 = vmatpush3.msra.mxu0 %v1457_v42 }
 0x464   : > { %2080 = vmatprep.subr.mxu0 %v2447_v0 }
 0x506   : > { %v2057_v10 = vpop.f32.mrf.mxu1 }
 0x508   : > { %v1263_v11 = vpop.f32.mrf.mxu1 }
 0x51c   : > { %v2052_v8 = vpop.f32.mrf.mxu0 }
 0x51e   : > { %v1179_v9 = vpop.f32.mrf.mxu0 }
 0x51f   : > { %1272 = vxpose.xlu0.b32.start [1/2] (short) (narrow) %v1179_v9, 8 }
 0x523   : > { %1273 = vxpose.xlu0.b32.end [2/2] (short) (narrow) %v2052_v8, 8 }
 0x527   : > { %1304 = vxpose.xlu0.b32.start [1/2] (short) (narrow) %v1263_v11, 8  ;;  %v1566_v11 = vld [vmem:[#allocation10 + $0x18] sm:$0xff] }
 0x528   : > { %2070 = vmatpush3.msra.mxu1 %v1566_v11 }
 0x529   : > { %2071 = vmatprep.subr.mxu1 %v2447_v0 }
 0x52a   : > { %2072 = vmatpush3.msra.mxu1 %v1565_v13 }
 0x52b   : > { %1305 = vxpose.xlu0.b32.end [2/2] (short) (narrow) %v2057_v10, 8  ;;  %2073 = vmatprep.subr.mxu1 %v2447_v0 }
 0x52c   : > { %2074 = vmatpush3.msra.mxu1 %v1564_v17 }
 0x52d   : > { %2075 = vmatprep.subr.mxu1 %v2447_v0 }
 0x59b   : > { %v1288_v24 = vpop.trf.xlu0 }
 0x59c   : > { %v1336_v27 = vcombine.high %v1288_v24, %v2447_v0  ;;  %v1343_v29 = vrot.slane %v1288_v24, %v1342_v25  ;;  %v1561_v24 = vrot.slane %v2840_v21, %v638_v15  ;;  %v1656_v15 = vld [vmem:[%s2997_s16 + $0x28] sm:$0xff] }
 0x59e   : > { %v1350_v33 = vrot.slane %v1336_v27, %v1342_v25 }
 0x5a3   : > { %v1320_v28 = vpop.trf.xlu0 }
 0x5a4   : > { %v1351_v31 = vcombine.high %v1320_v28, %v2447_v0  ;;  %v1358_v32 = vrot.slane %v1320_v28, %v1342_v25  ;;  %v1658_v28 = vld [vmem:[%s2997_s16 + $0x38] sm:$0xff] }
 0x5a6   : > { %v1365_v34 = vrot.slane %v1351_v31, %v1342_v25  ;;  %v1366_v35 = vcombine.low %v1343_v29, %v1358_v32  ;;  %v1367_v36 = vcombine.high %v1343_v29, %v1358_v32  ;;  %v1655_v29 = vld [vmem:[%s2997_s16 + $0x20] sm:$0xff]  ;;  %v1653_v31 = vld [vmem:[%s2997_s16 + $0x10] sm:$0xff]  ;;  %v1652_v32 = vld [vmem:[%s2997_s16 + $0x8] sm:$0xff] }
 0x5a8   : > { %v1374_v37 = vrot.slane %v1366_v35, %v1373_v30  ;;  %v1381_v38 = vrot.slane %v1367_v36, %v1373_v30  ;;  %v1382_v39 = vcombine.low %v1350_v33, %v1365_v34  ;;  %v1383_v41 = vcombine.high %v1350_v33, %v1365_v34  ;;  %v1651_v33 = vld [vmem:[%s2997_s16] sm:$0xff] }
 0x5a9   : > { %v1948_v34 = vld [vmem:[%s2998_s21] ss:$0 sm:$0xff] }
 0x5aa   : > { %v1390_v43 = vrot.slane %v1382_v39, %v1373_v30  ;;  %v1397_v44 = vrot.slane %v1383_v41, %v1373_v30  ;;  %v1402_v45 = vcombine.low %v1374_v37, %v1381_v38  ;;  %v1945_v46 = vcombine.high %v1374_v37, %v1381_v38 }
 0x5ac   : > { %v1409_v47 = vrot.slane %v1402_v45, %v1342_v25  ;;  %v1417_v48 = vrot.slane %v1945_v46, %v1342_v25  ;;  %v1418_v49 = vcombine.low %v1390_v43, %v1397_v44  ;;  %v1946_v50 = vcombine.high %v1390_v43, %v1397_v44 }
 0x5ae   : > { %v1425_v51 = vrot.slane %v1418_v49, %v1342_v25  ;;  %v1433_v52 = vrot.slane %v1946_v50, %v1342_v25  ;;  %v1434_v53 = vcombine.low %v1409_v47, %v1417_v48 }
 0x5b0   : > { %v1442_v54 = vcombine.low %v1425_v51, %v1433_v52  ;;  %v1441_v55 = vrot.slane %v1434_v53, %v1373_v30 }
 0x5b2   : > { %v1449_v56 = vrot.slane %v1442_v54, %v1373_v30  ;;  %v1654_v30 = vld [vmem:[%s2997_s16 + $0x18] sm:$0xff] }
 0x5b4   : > { %v1451_v57 = vcombine.high %v1441_v55, %v1449_v56  ;;  %v1450_v58 = vcombine.low %v1441_v55, %v1449_v56 }
 0x5b6   : > { %1453 = vrot.lane.b32.xlu0 %v1451_v57, %s2452_s6  ;;  %v1754_v57 = vrot.slane %v2840_v21, %v719_v40 }
 0x628   : > { %v1454_v59 = vpop.permute.xlu0 %1453 }
 0x629   : > { %v1456_v60 = vsel %vm872_vm2, %v1450_v58, %v1454_v59  ;;  %v1759_v59 = vrot.slane %v2840_v21, %v1463_v61 }
 0x62a   : > { %2067 = vmatmul.mubr.msk.f32.vlgmr.msra.gmra.mxu0 %vm556_vm1, %v1456_v60 }
 0x62b   : > { %2096 = vmatprep.mubr.msk.f32.mxu0 %vm2448_vm0, %v2447_v0  ;;  %2081 = vmatpush3.msra.mxu0 %v1658_v28 }
 0x62c   : > { %2082 = vmatprep.subr.mxu0 %v2447_v0 }
 0x62d   : > { %2083 = vmatpush3.msra.mxu0 %v1657_v14 }
 0x62e   : > { %2084 = vmatprep.subr.mxu0 %v2447_v0 }
 0x62f   : > { %2085 = vmatpush3.msra.mxu0 %v1656_v15 }
 0x630   : > { %2086 = vmatprep.subr.mxu0 %v2447_v0 }
 0x631   : > { %2087 = vmatpush3.msra.mxu0 %v1655_v29 }
 0x632   : > { %2088 = vmatprep.subr.mxu0 %v2447_v0 }
 0x633   : > { %2089 = vmatpush3.msra.mxu0 %v1654_v30 }
 0x634   : > { %2090 = vmatprep.subr.mxu0 %v2447_v0 }
 0x635   : > { %2091 = vmatpush3.msra.mxu0 %v1653_v31 }
 0x636   : > { %2092 = vmatprep.subr.mxu0 %v2447_v0 }
 0x637   : > { %2093 = vmatpush3.msra.mxu0 %v1652_v32 }
 0x638   : > { %2094 = vmatprep.subr.mxu0 %v2447_v0  ;;  %v1661_v0 = vsub.s32 4, %v2750_v12 }
 0x639   : > { %2095 = vmatpush3.msra.mxu0 %v1651_v33 }
 0x63a   : > { %v1662_v44 = vrot.slane %v2757_v16, %v1661_v0 }
 0x6ea   : > { %v1534_v63 = vpop.f32.mrf.mxu0 }
 0x6eb   : > { %v1535_v1 = vadd.f32 %v1534_v63, %v1464_v62 }
 0x6ec   : > { %v2068_v2 = vpop.f32.mrf.mxu0 }
 0x6ed   : > { %v1538_v3 = vadd.f32 %v1535_v1, %v2721_v5  ;;  %v1563_v5 = vld [vmem:[#allocation10] sm:$0xff] }
 0x6ee   : > { %2076 = vmatpush3.msra.mxu1 %v1563_v5 }
 0x6ef   : > { %v1539_v4 = vsel %vm556_vm1, %v1538_v3, 0.0 }
 0x6f0   : > { %1540 = vadd.xlane.f32.xlu1 %v1539_v4 }
 0x779   : > { %v1541_v6 = vpop.xlane.xlu1 %1540 }
 0x77a   : > { %v1543_v7 = vmul.f32 0.03125, %v1541_v6 }
 0x77c   : > { %v1544_v8 = vsub.f32 %v1538_v3, %v1543_v7 }
 0x77e   : > { %v1545_v9 = vmul.f32 %v1544_v8, %v1544_v8 }
 0x780   : > { %v1546_v10 = vsel %vm556_vm1, %v1545_v9, 0.0 }
 0x781   : > { %1547 = vadd.xlane.f32.xlu0 %v1546_v10 }
 0x80a   : > { %v1548_v18 = vpop.xlane.xlu0 %1547 }
 0x80b   : > { %v1549_v19 = vmul.f32 0.03125, %v1548_v18 }
 0x80d   : > { %v1550_v20 = vadd.f32 1e-12, %v1549_v19 }
 0x80f   : > { %2208 = vrsqrt.f32 %v1550_v20 }
 0x81c   : > { %v2209_v23 = vpop.eup %2208 }
 0x81d   : > { %v1552_v25 = vmul.f32 %v2209_v23, %v1544_v8 }
 0x81f   : > { %v1557_v26 = vmul.f32 %v1556_v22, %v1552_v25 }
 0x821   : > { %v1562_v27 = vadd.f32 %v1561_v24, %v1557_v26 }
 0x823   : > { %2078 = vmatmul.mubr.msk.f32.vlgmr.msra.gmra.mxu1 %vm556_vm1, %v1562_v27 }
 0x8e3   : > { %v1642_v35 = vpop.f32.mrf.mxu1 }
 0x8e4   : > { %v1643_v36 = vadd.f32 %v1948_v34, %v1642_v35 }
 0x8e5   : > { %v2079_v37 = vpop.f32.mrf.mxu1 }
 0x8e6   : > { %v1647_v38 = vmul.f32 0.70710677, %v1643_v36  ;;  %v1646_v41 = vmul.f32 0.5, %v1643_v36 }
 0x8e8   : > { %2210 = verf.f32 %v1647_v38 }
 0x8f5   : > { %v2211_v39 = vpop.eup %2210 }
 0x8f6   : > { %v1649_v42 = vadd.f32 1.0, %v2211_v39 }
 0x8f8   : > { %v1650_v43 = vmul.f32 %v1649_v42, %v1646_v41 }
 0x8fa   : > { %2097 = vmatmul.mubr.msk.f32.vlgmr.msra.gmra.mxu0 %vm1663_vm4, %v1650_v43 }
 0x9ba   : > { %v1733_v45 = vpop.f32.mrf.mxu0 }
 0x9bb   : > { %v1734_v46 = vadd.f32 %v1733_v45, %v1662_v44 }
 0x9bc   : > { %v2098_v47 = vpop.f32.mrf.mxu0 }
 0x9bd   : > { %v1737_v48 = vadd.f32 %v1734_v46, %v1562_v27 }
 0x9bf   : > { %v1738_v49 = vsel %vm556_vm1, %v1737_v48, 0.0 }
 0x9c0   : > { %1739 = vadd.xlane.f32.xlu1 %v1738_v49 }
 0xa49   : > { %v1740_v50 = vpop.xlane.xlu1 %1739 }
 0xa4a   : > { %v1741_v51 = vmul.f32 0.03125, %v1740_v50 }
 0xa4c   : > { %v1742_v52 = vsub.f32 %v1737_v48, %v1741_v51 }
 0xa4e   : > { %v1743_v53 = vmul.f32 %v1742_v52, %v1742_v52 }
 0xa50   : > { %v1744_v54 = vsel %vm556_vm1, %v1743_v53, 0.0 }
 0xa51   : > { %1745 = vadd.xlane.f32.xlu1 %v1744_v54 }
 0xada   : > { %v1746_v55 = vpop.xlane.xlu1 %1745 }
 0xadb   : > { %v1747_v56 = vmul.f32 0.03125, %v1746_v55 }
 0xadd   : > { %v1748_v16 = vadd.f32 1e-12, %v1747_v56 }
 0xadf   : > { %2212 = vrsqrt.f32 %v1748_v16 }
 0xaec   : > { %v2213_v58 = vpop.eup %2212 }
 0xaed   : > { %v1750_v60 = vmul.f32 %v2213_v58, %v1742_v52 }
 0xaef   : > { %v1755_v62 = vmul.f32 %v1754_v57, %v1750_v60 }
 0xaf1   : > { %v1760_v63 = vadd.f32 %v1759_v59, %v1755_v62 }
 0xaf3   : > { %1761 = vst.msk [vmem:[%s542_s20] sm:$0xff] %vm556_vm1, %v1760_v63 }
 0xaf4   : > { %2363 = shalt.err (!%p2360_p1)
}
 0xaf5   : > { %s2364_s24 = scalar_lea.hbm %s1775_s15, 128  ;;  %s2368_s17 = scalar_lea.hbm %s3001_s8, 256 }
 0xaf6   : > { %p2365_p4 = scmp.ne.s32.totalorder %s1775_s15, %s2364_s24  ;;  %p2369_p11 = scmp.lt.s32.totalorder %s1775_s15, %s3001_s8 }
 0xaf7   : > { %p2370_p2 = scmp.lt.s32.totalorder %s2368_s17, %s2364_s24 }
 0xaf8   : > { %p2366_p6 = pnand %p2365_p4, %p3002_p9 }
 0xaf9   : > { %p2371_p12 = por %p2370_p2, %p2369_p11 }
 0xafa   : > { %p2367_p8 = pneg %p2366_p6 }
 0xafc   : > { %p2372_p3 = pnand %p2371_p12, %p2367_p8 }
 0xafe   : > { %2375 = shalt.err (!%p2372_p3)
}
 0xaff   : > { %2113 = dma.vmem_to_hbm [thread:$0]  (%p3002_p9), %s1778_s18, 128, %s1775_s15, %s1763_s27  }
 0xb00 PF: > { %s3003_s26 = sld [smem:[#allocation16_spill]] }
 0xb01   : > { %s3004_s13 = sld [smem:[#allocation20_spill]] }
 0xb02   : > { %s3005_s20 = sld [smem:[#allocation19_spill]] }
 0xb06   : > { %s1789_s29 = sand.u32 1, %s3003_s26  }
 0xb07   : > { %p3006_p0 = scmp.ne.s32.totalorder %s3004_s13, 0  ;;  %s1790_s30 = scalar_lea.sflag [#allocation4], %s1789_s29 }
 0xb08   : > { %p3007_p7 = scmp.ge.s32.totalorder %s3005_s20, 2 }
 0xb0a   : > { %p2133_p10 = pnand %p3007_p7, %p3006_p0 }
 0xb0c   : > { %p2134_p13 = pneg %p2133_p10 }
 0xb0e   : > { %2413 = dma.done.wait (%p2134_p13), %s1790_s30, 128  }
 0xb0f   : > { %2415 = vsyncadd (%p2134_p13), %s1790_s30, 4294967168  ;;  %s32_s26 = sadd.s32 1, %s3005_s20   ;;  %s3008_s14 = sld [smem:[#allocation17_spill]] }
 0xb10   : > { %p29_p5 = scmp.ge.s32.totalorder %s32_s26, 4   ;;  %s3009_s23 = sld [smem:[#allocation23_spill]] }
 0xb11   : > { %s3010_s12 = sld [smem:[#allocation21_spill]]  ;;  %s3011_s21 = smov %s2422_s22 }
 0xb12   : > { %s3013_s24 = smov %s2434_s25 }
 0xb13   :  { %31 = sbr.rel (!%p29_p5) target bundleno = 15 (0xf), region = 145 }
 0xb15   : > { %s3012_s22 = smov %s3008_s14 }
 0xb17   : > { %s3014_s25 = smov %s3010_s12 }
 0xb18   :  { %1795 = vsyncpa [#allocation3], 1 }
 0xb19   :  { %1797 = vsyncpa [#allocation3 + $0x1], 1 }
 0xb1a   :  { %1798 = vsyncpa [#allocation6], 1 }
 0xb1b   :  { %1800 = vsyncpa [#allocation6 + $0x1], 1 }
 0xb1c   :  { %1801 = vsyncpa [#allocation9], 1 }
 0xb1d   :  { %1802 = vsyncpa [#allocation4], 1 }
 0xb1e   :  { %1804 = vsyncpa [#allocation4 + $0x1], 1 }

</bundles_post_ra>
